<compile_context>
chip_gen: v7x
topology: tpu7x:2x2x1
jax: 0.10.0
libtpu: 0.0.40
codegen_flags: <defaults>
</compile_context>

<pallas_src>
import jax
import jax.numpy as jnp
from jax import lax
from jax.experimental import pallas as pl
from jax.experimental.pallas import tpu as pltpu

_LANE = 128
_MAX_CHUNKS = 128  # cap on the unrolled per-tile accumulate loop (T <= 16384)


def _round_up(v, m):
    return -(-v // m) * m


def _vmem_capacity_bytes():
    try:
        return int(pltpu.get_tpu_info().vmem_capacity_bytes)
    except Exception:
        return 64 * 1024 * 1024  # conservative: v7x per-TensorCore VMEM


def _make_kernel(Bn, C, Cr, T, hw, n_tiles):
    """Build the kernel closure over the static shape parameters."""
    inv_hw = 1.0 / float(hw)
    chunks = T // _LANE
    last_base = (n_tiles - 1) * T
    ragged = (n_tiles * T) != hw

    def _accumulate(x_ref, sum_acc, max_acc, base):
        # base is None for a guaranteed-full tile, otherwise the static element
        # offset of the (possibly ragged) last tile.
        s = sum_acc[...]
        m = max_acc[...]
        for j in range(chunks):
            start = j * _LANE
            rem = None
            if base is not None:
                r = hw - base - start  # static
                if r <= 0:
                    break              # all later chunks are fully OOB
                if r < _LANE:
                    rem = r            # partially valid chunk -> mask
            xs = x_ref[:, :, start:start + _LANE].astype(jnp.float32)
            if rem is None:
                s = s + xs
                m = jnp.maximum(m, xs)
            else:
                lane = lax.broadcasted_iota(jnp.int32, xs.shape, 2)
                valid = lane < rem
                s = s + jnp.where(valid, xs, 0.0)
                m = jnp.maximum(m, jnp.where(valid, xs, -jnp.inf))
        sum_acc[...] = s
        max_acc[...] = m

    def kernel(x_ref, w1t_ref, w2t_ref, scale_ref, shift_ref, out_ref,
               sum_acc, max_acc, p_buf):
        # x_ref:     (Bn, C, T) block of the (N, C, hw) input
        # w1t_ref:   (C, Cr)    w2t_ref: (Cr, C)   (transposed conv weights)
        # scale/shift_ref: (1, Cr) folded eval-mode BN affine
        # out_ref:   (Bn, 1, C)
        # sum_acc / max_acc: (Bn, C, 128) f32 lane-wide running reductions
        # p_buf:     (2*Bn, C) f32 packed [avg ; max]
        t = pl.program_id(1)

        @pl.when(t == 0)
        def _init():
            sum_acc[...] = jnp.zeros_like(sum_acc)
            max_acc[...] = jnp.full_like(max_acc, -jnp.inf)

        if not ragged:
            _accumulate(x_ref, sum_acc, max_acc, None)
        elif n_tiles == 1:
            _accumulate(x_ref, sum_acc, max_acc, 0)
        else:
            @pl.when(t < n_tiles - 1)
            def _full_tiles():
                _accumulate(x_ref, sum_acc, max_acc, None)

            @pl.when(t == n_tiles - 1)
            def _ragged_tile():
                _accumulate(x_ref, sum_acc, max_acc, last_base)

        @pl.when(t == n_tiles - 1)
        def _finalize():
            # Single cross-lane reduce of the lane-wide accumulators.
            p_buf[0:Bn, :] = jnp.sum(sum_acc[...], axis=-1) * inv_hw
            p_buf[Bn:2 * Bn, :] = jnp.max(max_acc[...], axis=-1)
            p = p_buf[...]                                           # (2Bn, C)

            # Conv2d(C, Cr, 1, bias=False) on a 1x1 map  == p @ w1.T
            h = jnp.dot(p, w1t_ref[...],
                        preferred_element_type=jnp.float32)          # (2Bn, Cr)
            # eval-mode BatchNorm2d(Cr) == per-channel affine; then ReLU
            h = jnp.maximum(h * scale_ref[...] + shift_ref[...], 0.0)
            # Conv2d(Cr, C, 1, bias=False)               == h @ w2.T
            o = jnp.dot(h, w2t_ref[...],
                        preferred_element_type=jnp.float32)          # (2Bn, C)
            o = o[0:Bn, :] + o[Bn:2 * Bn, :]                         # (Bn, C)
            sig = 1.0 / (1.0 + jnp.exp(-o))                          # EUP exp
            out_ref[:, 0, :] = sig.astype(out_ref.dtype)

    return kernel


def channel_attention(x, w1, w2, bn_gamma=None, bn_beta=None, bn_mean=None,
                      bn_var=None, eps=1e-5, max_lanes_per_tile=None):
    """x: (N, C, H, W) NCHW.  Returns sigmoid attention of shape (N, C, 1, 1).

    Pass bn_* = None for the bn=False variant (identity affine).
    max_lanes_per_tile optionally caps the spatial tile (testing / tuning).
    """
    N, C, H, W = x.shape
    Cr = w1.shape[0]
    assert w1.shape == (Cr, C) and w2.shape == (C, Cr)

    hw = H * W
    itemsize = jnp.dtype(x.dtype).itemsize
    vmem_cap = _vmem_capacity_bytes()

    # Fixed VMEM: double-buffered (f32) weights + BN affine.
    fixed_bytes = 2 * (2 * C * Cr + 2 * Cr) * 4
    budget = int(vmem_cap * 0.70) - fixed_bytes
    budget = max(budget, 2 * C * _LANE * itemsize + 4 * C * _LANE * 4)

    # Spatial tile: largest 128-multiple that fits the (double-buffered) budget,
    # capped by the full row and by the unrolled-chunk-count limit.
    T_full = _round_up(hw, _LANE)
    t_fit = max(_LANE, (budget // (2 * C * itemsize)) // _LANE * _LANE)
    T = min(T_full, _MAX_CHUNKS * _LANE, t_fit)
    if max_lanes_per_tile is not None:
        T = min(T, max(_LANE, (int(max_lanes_per_tile) // _LANE) * _LANE))
    n_tiles = -(-hw // T)

    # Batch blocking: widen while it still fits the budget (helps small C).
    def _step_bytes(bn):
        return (2 * bn * C * T * itemsize        # double-buffered x blocks
                + 2 * bn * C * _LANE * 4         # f32 accumulators (scratch)
                + 2 * bn * C * 4                 # packed pooled scratch
                + 2 * bn * C * itemsize)         # double-buffered out blocks

    Bn = 1
    while Bn < N and N % (Bn * 2) == 0 and _step_bytes(Bn * 2) <= budget:
        Bn *= 2

    needed = _step_bytes(Bn) + fixed_bytes
    vmem_limit = min(max(needed + (4 << 20), 32 << 20),
                     max(needed + (1 << 20), vmem_cap - (4 << 20)))
    vmem_limit = min(vmem_limit, vmem_cap)

    x_flat = x.reshape(N, C, hw)                 # no padding pass

    # Transposed weights (native orientation for p @ w1.T / h @ w2.T), f32.
    w1t = jnp.asarray(w1.T, jnp.float32)         # (C, Cr)
    w2t = jnp.asarray(w2.T, jnp.float32)         # (Cr, C)

    # Fold eval-mode BN into a per-channel affine (scale, shift), shape (1, Cr).
    if bn_gamma is None:
        scale = jnp.ones((1, Cr), jnp.float32)
        shift = jnp.zeros((1, Cr), jnp.float32)
    else:
        inv_std = 1.0 / jnp.sqrt(bn_var.astype(jnp.float32) + eps)
        g = bn_gamma.astype(jnp.float32) * inv_std
        scale = g.reshape(1, Cr)
        shift = (bn_beta.astype(jnp.float32)
                 - bn_mean.astype(jnp.float32) * g).reshape(1, Cr)

    kernel = _make_kernel(Bn, C, Cr, T, hw, n_tiles)

    cost = pl.CostEstimate(
        flops=2 * N * C * hw + 8 * N * C * Cr,
        transcendentals=N * C,
        bytes_accessed=(N * C * hw * itemsize      # streamed input
                        + N * C * itemsize         # output
                        + 2 * C * Cr * 4 + 2 * Cr * 4))

    out = pl.pallas_call(
        kernel,
        out_shape=jax.ShapeDtypeStruct((N, 1, C), x.dtype),
        grid_spec=pltpu.PrefetchScalarGridSpec(
            num_scalar_prefetch=0,
            grid=(N // Bn, n_tiles),
            in_specs=[
                pl.BlockSpec((Bn, C, T), lambda n, t: (n, 0, t)),   # x tiles
                pl.BlockSpec((C, Cr), lambda n, t: (0, 0)),         # w1.T
                pl.BlockSpec((Cr, C), lambda n, t: (0, 0)),         # w2.T
                pl.BlockSpec((1, Cr), lambda n, t: (0, 0)),         # bn scale
                pl.BlockSpec((1, Cr), lambda n, t: (0, 0)),         # bn shift
            ],
            out_specs=pl.BlockSpec((Bn, 1, C), lambda n, t: (n, 0, 0)),
            scratch_shapes=[
                pltpu.VMEM((Bn, C, _LANE), jnp.float32),   # lane-wide sum
                pltpu.VMEM((Bn, C, _LANE), jnp.float32),   # lane-wide max
                pltpu.VMEM((2 * Bn, C), jnp.float32),      # packed [avg ; max]
            ],
        ),
        compiler_params=pltpu.CompilerParams(
            dimension_semantics=("parallel", "arbitrary"),
            vmem_limit_bytes=int(vmem_limit),
        ),
        cost_estimate=cost,
    )(x_flat, w1t, w2t, scale, shift)

    return out.reshape(N, C, 1, 1)


def _reference(x, w1, w2, bn_gamma, bn_beta, bn_mean, bn_var, eps=1e-5):
    """Pure-JAX reference matching the PyTorch forward (eval-mode BN)."""
    avg_p = jnp.mean(x, axis=(2, 3))
    max_p = jnp.max(x, axis=(2, 3))
    inv_std = 1.0 / jnp.sqrt(bn_var + eps)

    def fc(p):
        h = p @ w1.T
        h = (h - bn_mean) * inv_std * bn_gamma + bn_beta
        h = jnp.maximum(h, 0.0)
        return h @ w2.T

    out = jax.nn.sigmoid(fc(avg_p) + fc(max_p))
    return out.reshape(x.shape[0], x.shape[1], 1, 1)


def _reference_nobn(x, w1, w2):
    avg_p = jnp.mean(x, axis=(2, 3))
    max_p = jnp.max(x, axis=(2, 3))

    def fc(p):
        return jnp.maximum(p @ w1.T, 0.0) @ w2.T

    out = jax.nn.sigmoid(fc(avg_p) + fc(max_p))
    return out.reshape(x.shape[0], x.shape[1], 1, 1)


if __name__ == "__main__":
    key = jax.random.PRNGKey(0)

    # Cases exercise: single-tile full, single-tile ragged (13x13 -> masked),
    # forced multi-tile streaming, forced multi-tile + ragged last tile.
    cases = [
        ((2, 16, 32, 32), None),
        ((2, 16, 13, 13), None),
        ((2, 16, 32, 32), 256),
        ((2, 16, 13, 13), 128),
    ]

    x = w1 = w2 = None
    for (N, C, H, W), max_lanes in cases:
        key, k_x, k_w1, k_w2, k_g, k_b, k_m, k_v = jax.random.split(key, 8)
        Cr = C // 8

        x = jax.random.normal(k_x, (N, C, H, W), dtype=jnp.float32)

        # Conv2d(C, Cr, 1, bias=False) weight (Cr, C, 1, 1) -> (Cr, C)
        w1 = 0.1 * jax.random.normal(k_w1, (Cr, C), dtype=jnp.float32)
        # Conv2d(Cr, C, 1, bias=False) weight (C, Cr, 1, 1) -> (C, Cr)
        w2 = 0.1 * jax.random.normal(k_w2, (C, Cr), dtype=jnp.float32)

        # BatchNorm2d(Cr) parameters / running stats (eval mode).
        bn_gamma = 1.0 + 0.1 * jax.random.normal(k_g, (Cr,), dtype=jnp.float32)
        bn_beta = 0.1 * jax.random.normal(k_b, (Cr,), dtype=jnp.float32)
        bn_mean = 0.1 * jax.random.normal(k_m, (Cr,), dtype=jnp.float32)
        bn_var = jnp.abs(jax.random.normal(k_v, (Cr,), dtype=jnp.float32)) + 0.5

        out = channel_attention(x, w1, w2, bn_gamma, bn_beta, bn_mean, bn_var,
                                max_lanes_per_tile=max_lanes)
        out = jax.block_until_ready(out)

        ref = _reference(x, w1, w2, bn_gamma, bn_beta, bn_mean, bn_var)
        assert out.shape == (N, C, 1, 1)
        assert jnp.allclose(out, ref, atol=1e-5, rtol=1e-5), \
            f"mismatch vs reference for shape {(N, C, H, W)}, cap={max_lanes}"

    # bn=False variant (identity affine path).
    out = jax.block_until_ready(channel_attention(x, w1, w2))
    ref = _reference_nobn(x, w1, w2)
    assert jnp.allclose(out, ref, atol=1e-5, rtol=1e-5), "mismatch (bn=False)"

    print("KERNEL_OK")
</pallas_src>

<mosaic_0001>
module attributes {stable_mosaic.version = 11 : i64} {
  func.func @kernel(%arg0: i32, %arg1: i32, %arg2: memref<2x16x1024xf32, #tpu.memory_space<vmem>>, %arg3: memref<16x2xf32, #tpu.memory_space<vmem>>, %arg4: memref<2x16xf32, #tpu.memory_space<vmem>>, %arg5: memref<1x2xf32, #tpu.memory_space<vmem>>, %arg6: memref<1x2xf32, #tpu.memory_space<vmem>>, %arg7: memref<2x1x16xf32, #tpu.memory_space<vmem>>, %arg8: memref<2x16x128xf32, #tpu.memory_space<vmem>>, %arg9: memref<2x16x128xf32, #tpu.memory_space<vmem>>, %arg10: memref<4x16xf32, #tpu.memory_space<vmem>>) attributes {dimension_semantics = [#tpu.dimension_semantics<parallel>, #tpu.dimension_semantics<arbitrary>], iteration_bounds = array<i64: 1, 1>, scalar_prefetch = 0 : i64, scratch_operands = 3 : i64, tpu.core_type = #tpu.core_type<tc>, window_params = [{transform_indices = @transform_0, window_bounds = array<i64: 2, 16, 1024>}, {pipeline_mode = #tpu.pipeline_mode<synchronous>, transform_indices = @transform_1, window_bounds = array<i64: 16, 2>}, {pipeline_mode = #tpu.pipeline_mode<synchronous>, transform_indices = @transform_2, window_bounds = array<i64: 2, 16>}, {pipeline_mode = #tpu.pipeline_mode<synchronous>, transform_indices = @transform_3, window_bounds = array<i64: 1, 2>}, {pipeline_mode = #tpu.pipeline_mode<synchronous>, transform_indices = @transform_4, window_bounds = array<i64: 1, 2>}, {transform_indices = @transform_5, window_bounds = array<i64: 2, 1, 16>}]} {
    %c0_i32 = arith.constant 0 : i32
    %0 = arith.cmpi eq, %arg1, %c0_i32 : i32
    %1 = arith.extui %0 : i1 to i32
    %c0_i32_0 = arith.constant 0 : i32
    %2 = arith.cmpi ne, %1, %c0_i32_0 : i32
    scf.if %2 {
      %cst = arith.constant 0.000000e+00 : f32
      %34 = vector.broadcast %cst : f32 to vector<2x16x128xf32>
      %c0_31 = arith.constant 0 : index
      %c0_32 = arith.constant 0 : index
      %c0_33 = arith.constant 0 : index
      %35 = vector.load %arg8[%c0_31, %c0_32, %c0_33] : memref<2x16x128xf32, #tpu.memory_space<vmem>>, vector<2x16x128xf32>
      tpu.vector_store %arg8[%c0_31, %c0_32, %c0_33], %34 {strides = array<i32>} : memref<2x16x128xf32, #tpu.memory_space<vmem>>, vector<2x16x128xf32>,
      %cst_34 = arith.constant 0xFF800000 : f32
      %36 = vector.broadcast %cst_34 : f32 to vector<2x16x128xf32>
      %c0_35 = arith.constant 0 : index
      %c0_36 = arith.constant 0 : index
      %c0_37 = arith.constant 0 : index
      %37 = vector.load %arg9[%c0_35, %c0_36, %c0_37] : memref<2x16x128xf32, #tpu.memory_space<vmem>>, vector<2x16x128xf32>
      tpu.vector_store %arg9[%c0_35, %c0_36, %c0_37], %36 {strides = array<i32>} : memref<2x16x128xf32, #tpu.memory_space<vmem>>, vector<2x16x128xf32>,
    } else {
    }
    %c0 = arith.constant 0 : index
    %c0_1 = arith.constant 0 : index
    %c0_2 = arith.constant 0 : index
    %3 = vector.load %arg8[%c0, %c0_1, %c0_2] : memref<2x16x128xf32, #tpu.memory_space<vmem>>, vector<2x16x128xf32>
    %c0_3 = arith.constant 0 : index
    %c0_4 = arith.constant 0 : index
    %c0_5 = arith.constant 0 : index
    %4 = vector.load %arg9[%c0_3, %c0_4, %c0_5] : memref<2x16x128xf32, #tpu.memory_space<vmem>>, vector<2x16x128xf32>
    %c0_6 = arith.constant 0 : index
    %c0_7 = arith.constant 0 : index
    %c0_8 = arith.constant 0 : index
    %5 = vector.load %arg2[%c0_6, %c0_7, %c0_8] : memref<2x16x1024xf32, #tpu.memory_space<vmem>>, vector<2x16x128xf32>
    %6 = arith.addf %3, %5 : vector<2x16x128xf32>
    %7 = arith.maximumf %4, %5 : vector<2x16x128xf32>
    %c0_9 = arith.constant 0 : index
    %c0_10 = arith.constant 0 : index
    %c128 = arith.constant 128 : index
    %8 = vector.load %arg2[%c0_9, %c0_10, %c128] : memref<2x16x1024xf32, #tpu.memory_space<vmem>>, vector<2x16x128xf32>
    %9 = arith.addf %6, %8 : vector<2x16x128xf32>
    %10 = arith.maximumf %7, %8 : vector<2x16x128xf32>
    %c0_11 = arith.constant 0 : index
    %c0_12 = arith.constant 0 : index
    %c256 = arith.constant 256 : index
    %11 = vector.load %arg2[%c0_11, %c0_12, %c256] : memref<2x16x1024xf32, #tpu.memory_space<vmem>>, vector<2x16x128xf32>
    %12 = arith.addf %9, %11 : vector<2x16x128xf32>
    %13 = arith.maximumf %10, %11 : vector<2x16x128xf32>
    %c0_13 = arith.constant 0 : index
    %c0_14 = arith.constant 0 : index
    %c384 = arith.constant 384 : index
    %14 = vector.load %arg2[%c0_13, %c0_14, %c384] : memref<2x16x1024xf32, #tpu.memory_space<vmem>>, vector<2x16x128xf32>
    %15 = arith.addf %12, %14 : vector<2x16x128xf32>
    %16 = arith.maximumf %13, %14 : vector<2x16x128xf32>
    %c0_15 = arith.constant 0 : index
    %c0_16 = arith.constant 0 : index
    %c512 = arith.constant 512 : index
    %17 = vector.load %arg2[%c0_15, %c0_16, %c512] : memref<2x16x1024xf32, #tpu.memory_space<vmem>>, vector<2x16x128xf32>
    %18 = arith.addf %15, %17 : vector<2x16x128xf32>
    %19 = arith.maximumf %16, %17 : vector<2x16x128xf32>
    %c0_17 = arith.constant 0 : index
    %c0_18 = arith.constant 0 : index
    %c640 = arith.constant 640 : index
    %20 = vector.load %arg2[%c0_17, %c0_18, %c640] : memref<2x16x1024xf32, #tpu.memory_space<vmem>>, vector<2x16x128xf32>
    %21 = arith.addf %18, %20 : vector<2x16x128xf32>
    %22 = arith.maximumf %19, %20 : vector<2x16x128xf32>
    %c0_19 = arith.constant 0 : index
    %c0_20 = arith.constant 0 : index
    %c768 = arith.constant 768 : index
    %23 = vector.load %arg2[%c0_19, %c0_20, %c768] : memref<2x16x1024xf32, #tpu.memory_space<vmem>>, vector<2x16x128xf32>
    %24 = arith.addf %21, %23 : vector<2x16x128xf32>
    %25 = arith.maximumf %22, %23 : vector<2x16x128xf32>
    %c0_21 = arith.constant 0 : index
    %c0_22 = arith.constant 0 : index
    %c896 = arith.constant 896 : index
    %26 = vector.load %arg2[%c0_21, %c0_22, %c896] : memref<2x16x1024xf32, #tpu.memory_space<vmem>>, vector<2x16x128xf32>
    %27 = arith.addf %24, %26 : vector<2x16x128xf32>
    %28 = arith.maximumf %25, %26 : vector<2x16x128xf32>
    %c0_23 = arith.constant 0 : index
    %c0_24 = arith.constant 0 : index
    %c0_25 = arith.constant 0 : index
    %29 = vector.load %arg8[%c0_23, %c0_24, %c0_25] : memref<2x16x128xf32, #tpu.memory_space<vmem>>, vector<2x16x128xf32>
    tpu.vector_store %arg8[%c0_23, %c0_24, %c0_25], %27 {strides = array<i32>} : memref<2x16x128xf32, #tpu.memory_space<vmem>>, vector<2x16x128xf32>,
    %c0_26 = arith.constant 0 : index
    %c0_27 = arith.constant 0 : index
    %c0_28 = arith.constant 0 : index
    %30 = vector.load %arg9[%c0_26, %c0_27, %c0_28] : memref<2x16x128xf32, #tpu.memory_space<vmem>>, vector<2x16x128xf32>
    tpu.vector_store %arg9[%c0_26, %c0_27, %c0_28], %28 {strides = array<i32>} : memref<2x16x128xf32, #tpu.memory_space<vmem>>, vector<2x16x128xf32>,
    %c0_i32_29 = arith.constant 0 : i32
    %31 = arith.cmpi eq, %arg1, %c0_i32_29 : i32
    %32 = arith.extui %31 : i1 to i32
    %c0_i32_30 = arith.constant 0 : i32
    %33 = arith.cmpi ne, %32, %c0_i32_30 : i32
    scf.if %33 {
      %c0_31 = arith.constant 0 : index
      %c0_32 = arith.constant 0 : index
      %c0_33 = arith.constant 0 : index
      %34 = vector.load %arg8[%c0_31, %c0_32, %c0_33] : memref<2x16x128xf32, #tpu.memory_space<vmem>>, vector<2x16x128xf32>
      %cst = arith.constant dense<0.000000e+00> : vector<2x16xf32>
      %35 = vector.multi_reduction <add>, %34, %cst [2] : vector<2x16x128xf32> to vector<2x16xf32>
      %cst_34 = arith.constant 9.765625E-4 : f32
      %36 = vector.broadcast %cst_34 : f32 to vector<2x16xf32>
      %37 = arith.mulf %35, %36 : vector<2x16xf32>
      %c0_35 = arith.constant 0 : index
      %c0_36 = arith.constant 0 : index
      %38 = vector.load %arg10[%c0_35, %c0_36] : memref<4x16xf32, #tpu.memory_space<vmem>>, vector<2x16xf32>
      tpu.vector_store %arg10[%c0_35, %c0_36], %37 {strides = array<i32>} : memref<4x16xf32, #tpu.memory_space<vmem>>, vector<2x16xf32>,
      %c0_37 = arith.constant 0 : index
      %c0_38 = arith.constant 0 : index
      %c0_39 = arith.constant 0 : index
      %39 = vector.load %arg9[%c0_37, %c0_38, %c0_39] : memref<2x16x128xf32, #tpu.memory_space<vmem>>, vector<2x16x128xf32>
      %cst_40 = arith.constant dense<0xFF800000> : vector<2x16xf32>
      %40 = vector.multi_reduction <maximumf>, %39, %cst_40 [2] : vector<2x16x128xf32> to vector<2x16xf32>
      %c2 = arith.constant 2 : index
      %c0_41 = arith.constant 0 : index
      %41 = vector.load %arg10[%c2, %c0_41] : memref<4x16xf32, #tpu.memory_space<vmem>>, vector<2x16xf32>
      tpu.vector_store %arg10[%c2, %c0_41], %40 {strides = array<i32>} : memref<4x16xf32, #tpu.memory_space<vmem>>, vector<2x16xf32>,
      %c0_42 = arith.constant 0 : index
      %c0_43 = arith.constant 0 : index
      %42 = vector.load %arg10[%c0_42, %c0_43] : memref<4x16xf32, #tpu.memory_space<vmem>>, vector<4x16xf32>
      %c0_44 = arith.constant 0 : index
      %c0_45 = arith.constant 0 : index
      %43 = vector.load %arg3[%c0_44, %c0_45] : memref<16x2xf32, #tpu.memory_space<vmem>>, vector<16x2xf32>
      %cst_46 = arith.constant dense<0.000000e+00> : vector<4x2xf32>
      %44 = tpu.matmul %42, %43, %cst_46 {dimension_numbers = #tpu.dot_dimension_numbers<[1], [0], [0], [1], [0, 0, 1, 1], [], []>} : vector<4x16xf32>, vector<16x2xf32>, vector<4x2xf32> -> vector<4x2xf32>
      %c0_47 = arith.constant 0 : index
      %c0_48 = arith.constant 0 : index
      %45 = vector.load %arg5[%c0_47, %c0_48] : memref<1x2xf32, #tpu.memory_space<vmem>>, vector<1x2xf32>
      %46 = vector.broadcast %45 : vector<1x2xf32> to vector<4x2xf32>
      %47 = arith.mulf %44, %46 : vector<4x2xf32>
      %c0_49 = arith.constant 0 : index
      %c0_50 = arith.constant 0 : index
      %48 = vector.load %arg6[%c0_49, %c0_50] : memref<1x2xf32, #tpu.memory_space<vmem>>, vector<1x2xf32>
      %49 = vector.broadcast %48 : vector<1x2xf32> to vector<4x2xf32>
      %50 = arith.addf %47, %49 : vector<4x2xf32>
      %cst_51 = arith.constant 0.000000e+00 : f32
      %51 = vector.broadcast %cst_51 : f32 to vector<4x2xf32>
      %52 = arith.maximumf %50, %51 : vector<4x2xf32>
      %c0_52 = arith.constant 0 : index
      %c0_53 = arith.constant 0 : index
      %53 = vector.load %arg4[%c0_52, %c0_53] : memref<2x16xf32, #tpu.memory_space<vmem>>, vector<2x16xf32>
      %cst_54 = arith.constant dense<0.000000e+00> : vector<4x16xf32>
      %54 = tpu.matmul %52, %53, %cst_54 {dimension_numbers = #tpu.dot_dimension_numbers<[1], [0], [0], [1], [0, 0, 1, 1], [], []>} : vector<4x2xf32>, vector<2x16xf32>, vector<4x16xf32> -> vector<4x16xf32>
      %55 = vector.extract_strided_slice %54 {offsets = [0, 0], sizes = [2, 16], strides = [1, 1]} : vector<4x16xf32> to vector<2x16xf32>
      %56 = vector.extract_strided_slice %54 {offsets = [2, 0], sizes = [2, 16], strides = [1, 1]} : vector<4x16xf32> to vector<2x16xf32>
      %57 = arith.addf %55, %56 : vector<2x16xf32>
      %cst_55 = arith.constant 0.000000e+00 : f32
      %58 = vector.broadcast %cst_55 : f32 to vector<2x16xf32>
      %59 = arith.subf %58, %57 : vector<2x16xf32>
      %60 = math.exp %59 : vector<2x16xf32>
      %cst_56 = arith.constant 1.000000e+00 : f32
      %61 = vector.broadcast %cst_56 : f32 to vector<2x16xf32>
      %62 = arith.addf %61, %60 : vector<2x16xf32>
      %cst_57 = arith.constant 1.000000e+00 : f32
      %63 = vector.broadcast %cst_57 : f32 to vector<2x16xf32>
      %64 = arith.divf %63, %62 : vector<2x16xf32>
      %c0_58 = arith.constant 0 : index
      %c0_59 = arith.constant 0 : index
      %c0_60 = arith.constant 0 : index
      %65 = vector.load %arg7[%c0_58, %c0_59, %c0_60] : memref<2x1x16xf32, #tpu.memory_space<vmem>>, vector<2x1x16xf32>
      %66 = vector.shape_cast %65 : vector<2x1x16xf32> to vector<2x16xf32>
      %67 = vector.shape_cast %64 : vector<2x16xf32> to vector<2x1x16xf32>
      tpu.vector_store %arg7[%c0_58, %c0_59, %c0_60], %67 {strides = array<i32>} : memref<2x1x16xf32, #tpu.memory_space<vmem>>, vector<2x1x16xf32>,
    } else {
    }
    return
  }
  func.func @transform_0(%arg0: i32, %arg1: i32) -> (i32, i32, i32) {
    %c0_i32 = arith.constant 0 : i32
    %c0_i32_0 = arith.constant 0 : i32
    return %arg0, %c0_i32, %arg1 : i32, i32, i32
  }
  func.func @transform_1(%arg0: i32, %arg1: i32) -> (i32, i32) {
    %c0_i32 = arith.constant 0 : i32
    %c0_i32_0 = arith.constant 0 : i32
    %c0_i32_1 = arith.constant 0 : i32
    return %c0_i32, %c0_i32_0 : i32, i32
  }
  func.func @transform_2(%arg0: i32, %arg1: i32) -> (i32, i32) {
    %c0_i32 = arith.constant 0 : i32
    %c0_i32_0 = arith.constant 0 : i32
    %c0_i32_1 = arith.constant 0 : i32
    return %c0_i32, %c0_i32_0 : i32, i32
  }
  func.func @transform_3(%arg0: i32, %arg1: i32) -> (i32, i32) {
    %c0_i32 = arith.constant 0 : i32
    %c0_i32_0 = arith.constant 0 : i32
    %c0_i32_1 = arith.constant 0 : i32
    return %c0_i32, %c0_i32_0 : i32, i32
  }
  func.func @transform_4(%arg0: i32, %arg1: i32) -> (i32, i32) {
    %c0_i32 = arith.constant 0 : i32
    %c0_i32_0 = arith.constant 0 : i32
    %c0_i32_1 = arith.constant 0 : i32
    return %c0_i32, %c0_i32_0 : i32, i32
  }
  func.func @transform_5(%arg0: i32, %arg1: i32) -> (i32, i32, i32) {
    %c0_i32 = arith.constant 0 : i32
    %c0_i32_0 = arith.constant 0 : i32
    %c0_i32_1 = arith.constant 0 : i32
    return %arg0, %c0_i32, %c0_i32_0 : i32, i32, i32
  }
}

</mosaic_0001>

<bundles_post_ra>
// kernel: tpu_custom_call.1
= control target key start
LH: loop header
LB: loop body
LE: loop exit
PB: predicated region body
PF: predicated region fallthrough
CT: control target
= control target key end

     0   :  { %10 = vsyncpa [#allocation6], 0  ;;  %s656_s0 = inlined_call_operand.hbm [shape: f32[2,16,1024], index: 0, kind: input, shape index: {}]   ;;  %s657_s1 = inlined_call_operand.vmem [shape: f32[16,2], index: 1, kind: input, shape index: {}]   ;;  %s658_s2 = inlined_call_operand.vmem [shape: f32[2,16], index: 2, kind: input, shape index: {}]   ;;  %s659_s3 = inlined_call_operand.vmem [shape: f32[1,2], index: 3, kind: input, shape index: {}]   ;;  %s660_s4 = inlined_call_operand.vmem [shape: f32[1,2], index: 4, kind: input, shape index: {}]   ;;  %s661_s5 = inlined_call_operand.hbm [shape: f32[2,1,16], index: 5, kind: output, shape index: {}]  }
   0x1   :  { %11 = vsyncpa [#allocation7], 0  ;;  %s561_s18 = smov [#allocation5]   ;;  %s513_s22 = scalar_lea.hbm %s656_s0, 4096 }
   0x2   :  { %s17_s19 = sshll.u32 %s561_s18, 4  ;;  %p514_p0 = scmp.ne.s32.totalorder %s656_s0, %s513_s22  ;;  %s18_s19 = int_to_ptr.vmem [resolvable:$true] %s17_s19 }
   0x3   :  { %p517_p1 = scmp.lt.u32.totalorder %s513_s22, %s656_s0 }
   0x5   :  { %p519_p2 = pnand %p517_p1, %p514_p0 }
   0x7   :  { %522 = shalt.err (!%p519_p2)
}
   0x8   :  { %s523_s27 = scalar_lea.vmem %s18_s19, 4096  ;;  %p528_p4 = scmp.lt.s32.totalorder %s18_s19, %s18_s19 }
   0x9   :  { %p524_p3 = scmp.ne.s32.totalorder %s18_s19, %s523_s27  ;;  %p529_p5 = scmp.lt.s32.totalorder %s523_s27, %s523_s27 }
   0xb   :  { %p530_p6 = por %p529_p5, %p528_p4 }
   0xd   :  { %p531_p7 = pnand %p530_p6, %p524_p3 }
   0xf   :  { %534 = shalt.err (!%p531_p7)
}
  0x10   :  { %s562_s28 = smov 1024   ;;  %s563_s29 = smov 64  }
  0x11   :  { %23 = dma.hbm_to_vmem [thread:$0]  %s656_s0, 4096, %s18_s19, [#allocation6], %s562_s28, %s562_s28, %s563_s29  }
  0x12   :  { %557 = dma.done.wait [#allocation6], 4096  }
  0x13   :  { %558 = vsyncadd [#allocation6], 4294963200  ;;  %v57_v0 = vld [vmem:[#allocation5 + $0x80] sm:$0xff]  ;;  %v69_v1 = vld [vmem:[#allocation5 + $0x88] sm:$0xff]  ;;  %vm565_vm0 = vmmov 0   ;;  %vm193_vm1 = vcmask 130112  }
  0x14   :  { %v81_v2 = vld [vmem:[#allocation5 + $0x90] sm:$0xff]  ;;  %v73_v3 = vadd.f32 %v69_v1, %v57_v0  ;;  %v77_v4 = vmax.f32 %v57_v0, %v69_v1  ;;  %v613_v5 = vld [vmem:[#allocation5 + $0x98] sm:$0xff]  ;;  %v55_v6 = vld [vmem:[#allocation5] sm:$0xff]  ;;  %vm204_vm2 = vcmask 1041409   ;;  %vm207_vm3 = vcmask 123904  }
  0x15   :  { %v67_v8 = vld [vmem:[#allocation5 + $0x8] sm:$0xff]  ;;  %v79_v9 = vld [vmem:[#allocation5 + $0x10] sm:$0xff]  ;;  %v105_v10 = vld [vmem:[#allocation5 + $0xa0] sm:$0xff]  ;;  %vm249_vm4 = vcmask 130048   ;;  %vm345_vm5 = vcmask 1041408   ;;  %vm341_vm6 = vcmask 15360  }
  0x16   :  { %v85_v7 = vadd.f32 %v81_v2, %v73_v3  ;;  %v71_v11 = vadd.f32 %v67_v8, %v55_v6  ;;  %v75_v12 = vmax.f32 %v55_v6, %v67_v8  ;;  %v91_v14 = vld [vmem:[#allocation5 + $0x18] sm:$0xff]  ;;  %v58_v15 = vld [vmem:[#allocation5 + $0xc0] sm:$0xff]  ;;  %v70_v16 = vld [vmem:[#allocation5 + $0xc8] sm:$0xff]  ;;  %v89_v17 = vmax.f32 %v77_v4, %v81_v2 }
  0x17   :  { %v616_v18 = vld [vmem:[#allocation5 + $0xa8] sm:$0xff]  ;;  %v74_v20 = vadd.f32 %v70_v16, %v58_v15  ;;  %v82_v21 = vld [vmem:[#allocation5 + $0xd0] sm:$0xff]  ;;  %v78_v23 = vmax.f32 %v58_v15, %v70_v16  ;;  %v103_v26 = vld [vmem:[#allocation5 + $0x20] sm:$0xff]  ;;  %vm454_vm7 = vcmask 122880  }
  0x18   :  { %v97_v13 = vadd.f32 %v613_v5, %v85_v7  ;;  %v83_v19 = vadd.f32 %v79_v9, %v71_v11  ;;  %v87_v22 = vmax.f32 %v75_v12, %v79_v9  ;;  %v618_v25 = vld [vmem:[#allocation5 + $0xb0] sm:$0xff]  ;;  %v94_v27 = vld [vmem:[#allocation5 + $0xd8] sm:$0xff]  ;;  %v56_v30 = vld [vmem:[#allocation5 + $0x40] sm:$0xff]  ;;  %v101_v45 = vmax.f32 %v89_v17, %v613_v5 }
  0x19   :  { %v86_v29 = vadd.f32 %v82_v21, %v74_v20  ;;  %v68_v31 = vld [vmem:[#allocation5 + $0x48] sm:$0xff]  ;;  %v80_v32 = vld [vmem:[#allocation5 + $0x50] sm:$0xff]  ;;  %v90_v34 = vmax.f32 %v78_v23, %v82_v21  ;;  %v106_v37 = vld [vmem:[#allocation5 + $0xe0] sm:$0xff] }
  0x1a   :  { %v109_v24 = vadd.f32 %v105_v10, %v97_v13  ;;  %v95_v28 = vadd.f32 %v91_v14, %v83_v19  ;;  %v99_v33 = vmax.f32 %v87_v22, %v91_v14  ;;  %v115_v36 = vld [vmem:[#allocation5 + $0x28] sm:$0xff]  ;;  %v72_v38 = vadd.f32 %v68_v31, %v56_v30  ;;  %v141_v40 = vld [vmem:[#allocation5 + $0xb8] sm:$0xff]  ;;  %v127_v47 = vld [vmem:[#allocation5 + $0x30] sm:$0xff] }
  0x1b   :  { %v76_v39 = vmax.f32 %v56_v30, %v68_v31  ;;  %v98_v42 = vadd.f32 %v94_v27, %v86_v29  ;;  %v92_v43 = vld [vmem:[#allocation5 + $0x58] sm:$0xff]  ;;  %v102_v44 = vmax.f32 %v90_v34, %v94_v27  ;;  %v118_v48 = vld [vmem:[#allocation5 + $0xe8] sm:$0xff]  ;;  %v104_v54 = vld [vmem:[#allocation5 + $0x60] sm:$0xff]  ;;  %v113_v4 = vmax.f32 %v101_v45, %v105_v10 }
  0x1c   :  { %v121_v35 = vadd.f32 %v616_v18, %v109_v24  ;;  %v107_v41 = vadd.f32 %v103_v26, %v95_v28  ;;  %v84_v49 = vadd.f32 %v80_v32, %v72_v38  ;;  %v111_v51 = vmax.f32 %v99_v33, %v103_v26  ;;  %v139_v57 = vld [vmem:[#allocation5 + $0x38] sm:$0xff]  ;;  %v130_v58 = vld [vmem:[#allocation5 + $0xf0] sm:$0xff]  ;;  %v116_v63 = vld [vmem:[#allocation5 + $0x68] sm:$0xff] }
  0x1d   :  { %v88_v50 = vmax.f32 %v76_v39, %v80_v32  ;;  %v110_v53 = vadd.f32 %v106_v37, %v98_v42  ;;  %v114_v55 = vmax.f32 %v102_v44, %v106_v37  ;;  %v142_v0 = vld [vmem:[#allocation5 + $0xf8] sm:$0xff]  ;;  %v128_v7 = vld [vmem:[#allocation5 + $0x70] sm:$0xff]  ;;  %v125_v17 = vmax.f32 %v113_v4, %v616_v18  ;;  %v248_v18 = vld [vmem:[%s657_s1 + $0x8] sm:$0xff] }
  0x1e   :  { %v133_v46 = vadd.f32 %v618_v25, %v121_v35  ;;  %v119_v52 = vadd.f32 %v115_v36, %v107_v41  ;;  %v96_v59 = vadd.f32 %v92_v43, %v84_v49  ;;  %v123_v3 = vmax.f32 %v111_v51, %v115_v36  ;;  %v140_v13 = vld [vmem:[#allocation5 + $0x78] sm:$0xff] }
  0x1f   :  { %v100_v60 = vmax.f32 %v88_v50, %v92_v43  ;;  %v122_v62 = vadd.f32 %v118_v48, %v110_v53  ;;  %v126_v8 = vmax.f32 %v114_v55, %v118_v48  ;;  %v137_v22 = vmax.f32 %v125_v17, %v618_v25  ;;  %v247_v26 = vld [vmem:[%s657_s1] sm:$0xff] }
  0x20   :  { %v145_v56 = vadd.f32 %v141_v40, %v133_v46  ;;  %v131_v61 = vadd.f32 %v127_v47, %v119_v52  ;;  %v108_v1 = vadd.f32 %v104_v54, %v96_v59  ;;  %v135_v16 = vmax.f32 %v123_v3, %v127_v47 }
  0x21   :  { %v112_v2 = vmax.f32 %v100_v60, %v104_v54  ;;  %v134_v6 = vadd.f32 %v130_v58, %v122_v62  ;;  %v138_v19 = vmax.f32 %v126_v8, %v130_v58  ;;  %v149_v24 = vmax.f32 %v137_v22, %v141_v40  ;;  %v340_v62 = vld [vmem:[%s658_s2] sm:$0x3]  ;;  %s568_s2 = smov [#allocation8]  }
  0x22   :  { %170 = vadd.xlane.f32.xlu1 %v145_v56  ;;  %v143_v5 = vadd.f32 %v139_v57, %v131_v61  ;;  %v120_v9 = vadd.f32 %v116_v63, %v108_v1  ;;  %v147_v10 = vmax.f32 %v135_v16, %v139_v57  ;;  %v564_v27 = vmov 0.0|0.0   ;;  %v476_v1 = vld [vmem:[%s660_s4] ss:$0 sm:$0xff] }
  0x23   :  { %v124_v11 = vmax.f32 %v112_v2, %v116_v63  ;;  %v146_v12 = vadd.f32 %v142_v0, %v134_v6  ;;  %v150_v23 = vmax.f32 %v138_v19, %v142_v0  ;;  %496 = vmatprep.subr.bf16.mxu0 %v564_v27  ;;  %v497_v28 = vpack.c.bf16 %v248_v18, %v247_v26  ;;  %v475_v63 = vld [vmem:[%s659_s3] ss:$0 sm:$0xff]  ;;  %s462_s3 = sshll.u32 %s568_s2, 4  ;;  %s463_s3 = int_to_ptr.vmem [resolvable:$true] %s462_s3 }
  0x24   :  { %166 = vadd.xlane.f32.xlu0 %v143_v5  ;;  %v132_v14 = vadd.f32 %v128_v7, %v120_v9  ;;  %v566_v29 = vmov 0.0   ;;  %v182_v25 = vlaneseq  ;;  %s535_s4 = scalar_lea.vmem %s463_s3, 32  ;;  %p540_p9 = scmp.lt.s32.totalorder %s463_s3, %s463_s3 }
  0x25   :  { %v136_v15 = vmax.f32 %v124_v11, %v128_v7  ;;  %488 = vmatprep.mubr.msk.f32.mxu0 %vm565_vm0, %v566_v29  ;;  %491 = vmatprep.subr.mxu1 %v566_v29  ;;  %p536_p8 = scmp.ne.s32.totalorder %s463_s3, %s535_s4  ;;  %p541_p10 = scmp.lt.s32.totalorder %s535_s4, %s535_s4 }
  0x26   :  { %172 = vadd.xlane.f32.xlu1 %v146_v12  ;;  %v144_v20 = vadd.f32 %v140_v13, %v132_v14  ;;  %493 = vmatprep.mubr.msk.f32.mxu1 %vm565_vm0, %v566_v29  ;;  %v183_v30 = vand.u32 127, %v182_v25  ;;  %v185_v33 = vshrl.u32 %v182_v25, 7 }
  0x27   :  { %v148_v21 = vmax.f32 %v136_v15, %v140_v13  ;;  %498 = vmatpush3.bf16.msra.mxu0 %v497_v28  ;;  %492 = vmatpush3.msk.msra.mxu1 %vm345_vm5, %v340_v62  ;;  %v567_v15 = vmov 1966171168   ;;  %p542_p11 = por %p541_p10, %p540_p9 }
  0x28   :  { %168 = vadd.xlane.f32.xlu0 %v144_v20  ;;  %v188_v32 = vadd.s32 4294967288, %v183_v30  ;;  %v186_v36 = vsub.s32 %v183_v30, %v185_v33  ;;  %v431_v16 = vunpack.c.l.s4 %v567_v15 }
  0x29   :  { %p543_p12 = pnand %p542_p11, %p536_p8 }
  0x2a   :  { %215 = vmax.xlane.f32.xlu1 %v148_v21  ;;  %v191_v35 = vsub.s32 %v188_v32, %v185_v33  ;;  %v432_v17 = vunpack.c.0.s8 %v431_v16 }
  0x2c   :  { %213 = vmax.xlane.f32.xlu0 %v147_v10  ;;  %v435_v19 = vsub.s32 %v432_v17, %v185_v33 }
  0x2e   :  { %219 = vmax.xlane.f32.xlu1 %v150_v23 }
  0x30   :  { %217 = vmax.xlane.f32.xlu0 %v149_v24 }
  0xaf   :  { %v171_v31 = vpop.xlane.xlu1 %170 }
  0xb0   :  { %v176_v37 = vmul.f32 0.0009765625, %v171_v31 }
  0xb1   :  { %v167_v34 = vpop.xlane.xlu0 %166 }
  0xb2   :  { %v174_v40 = vmul.f32 0.0009765625, %v167_v34  ;;  %v198_v43 = vrot.slane %v176_v37, %v186_v36 }
  0xb3   :  { %v173_v38 = vpop.xlane.xlu1 %172 }
  0xb4   :  { %v177_v39 = vmul.f32 0.0009765625, %v173_v38  ;;  %v187_v46 = vrot.slane %v174_v40, %v186_v36 }
  0xb5   :  { %v169_v42 = vpop.xlane.xlu0 %168 }
  0xb6   :  { %v202_v41 = vrot.slane %v177_v39, %v191_v35  ;;  %v175_v44 = vmul.f32 0.0009765625, %v169_v42 }
  0xb7   :  { %v216_v45 = vpop.xlane.xlu1 %215 }
  0xb8   :  { %v203_v47 = vsel %vm193_vm1, %v202_v41, %v198_v43  ;;  %v192_v48 = vrot.slane %v175_v44, %v191_v35  ;;  %v232_v53 = vrot.slane %v216_v45, %v191_v35 }
  0xb9   :  { %v214_v49 = vpop.xlane.xlu0 %213 }
  0xba   :  { %v194_v50 = vsel %vm193_vm1, %v192_v48, %v187_v46  ;;  %v228_v54 = vrot.slane %v214_v49, %v186_v36 }
  0xbb   :  { %v220_v51 = vpop.xlane.xlu1 %219  ;;  %v205_v52 = vsel %vm204_vm2, %v203_v47, %v194_v50 }
  0xbc   :  { %208 = vst.msk [vmem:[#allocation4] sm:$0x3] %vm207_vm3, %v205_v52  ;;  %v241_v55 = vrot.slane %v220_v51, %v191_v35  ;;  %v233_v58 = vsel %vm193_vm1, %v232_v53, %v228_v54 }
  0xbd   :  { %v218_v56 = vpop.xlane.xlu0 %217 }
  0xbe   :  { %v237_v57 = vrot.slane %v218_v56, %v186_v36 }
  0xc0   :  { %v242_v59 = vsel %vm193_vm1, %v241_v55, %v237_v57 }
  0xc1   :  { %v243_v60 = vsel %vm204_vm2, %v242_v59, %v233_v58 }
  0xc2   :  { %245 = vst.msk [vmem:[#allocation4 + $0x2] sm:$0x3] %vm207_vm3, %v243_v60 }
  0xc9   :  { %v246_v61 = vld [vmem:[#allocation4] sm:$0xf] }
  0xca   :  { %489 = vmatmul.mubr.msk.f32.vlgmr.msra.gmra.mrb[0].mxu0 %vm249_vm4, %v246_v61 }
 0x19d   :  { %v319_v0 = vpop.f32.mrb[0].mxu0 }
 0x19e   :  { %v330_v2 = vmul.f32 %v475_v63, %v319_v0  ;;  %v490_v3 = vpop.f32.mrb[1].mxu0 }
 0x1a0   :  { %v338_v4 = vadd.f32 %v476_v1, %v330_v2 }
 0x1a2   :  { %v339_v5 = vmax.f32 %v338_v4, 0.0 }
 0x1a4   :  { %494 = vmatmul.mubr.msk.f32.vlgmr.msra.gmra.mrb[0].mxu1 %vm341_vm6, %v339_v5 }
 0x277   :  { %v415_v6 = vpop.f32.mrb[0].mxu1 }
 0x278   :  { %v420_v7 = vrot.slane %v415_v6, 2  ;;  %v495_v8 = vpop.f32.mrb[1].mxu1 }
 0x27a   :  { %v422_v9 = vadd.f32 %v420_v7, %v415_v6 }
 0x27c   :  { %v423_v11 = vsub.f32 0.0, %v422_v9 }
 0x27e   :  { %v424_v12 = vmul.f32 1.442695, %v423_v11 }
 0x280   :  { %509 = vpow2.f32 %v424_v12 }
 0x28a   :  { %v510_v13 = vpop.eup %509 }
 0x28b   :  { %v426_v14 = vadd.f32 1.0, %v510_v13 }
 0x28d   :  { %511 = vrcp.f32 %v426_v14 }
 0x297   :  { %v512_v20 = vpop.eup %511 }
 0x298   :  { %v436_v21 = vrot.slane %v512_v20, %v435_v19 }
 0x29a   :  { %v437_v10 = vcombine.high %v436_v21, %v436_v21  ;;  %v444_v22 = vrot.slane %v436_v21, %v435_v19 }
 0x29c   :  { %v451_v23 = vrot.slane %v437_v10, %v435_v19  ;;  %455 = vst.msk [vmem:[#allocation8] sm:$0x1] %vm454_vm7, %v444_v22 }
 0x29e   :  { %456 = vst.msk [vmem:[#allocation8 + $0x1] sm:$0x1] %vm454_vm7, %v451_v23 }
 0x29f   :  { %546 = shalt.err (!%p543_p12)
}
 0x2a0   :  { %s547_s17 = scalar_lea.hbm %s661_s5, 32 }
 0x2a1   :  { %p548_p13 = scmp.ne.s32.totalorder %s661_s5, %s547_s17  ;;  %p551_p0 = scmp.lt.u32.totalorder %s547_s17, %s661_s5 }
 0x2a3   :  { %p553_p1 = pnand %p551_p0, %p548_p13 }
 0x2a5   :  { %556 = shalt.err (!%p553_p1)
}
 0x2a6   :  { %s569_s22 = smov 16   ;;  %s570_s23 = smov 1  }
 0x2a7   :  { %468 = dma.vmem_to_hbm [thread:$0]  %s463_s3, 32, %s661_s5, [#allocation7], %s569_s22, %s569_s22, %s570_s23  }
 0x2a8   :  { %559 = dma.done.wait [#allocation7], 32  }
 0x2a9   :  { %560 = vsyncadd [#allocation7], 4294967264 }
 0x2aa   :  { %472 = vsyncpa [#allocation6], 1 }
 0x2ab   :  { %473 = vsyncpa [#allocation7], 1 }

</bundles_post_ra>
